<compile_context>
chip_gen: v5e
topology: v5e:2x2
jax: 0.10.0
libtpu: 0.0.40
codegen_flags: <defaults>
</compile_context>

<pallas_src>
import jax
import jax.numpy as jnp
from jax import lax
from jax.experimental import pallas as pl
from jax.experimental.pallas import tpu as pltpu

LANE = 128
SUBLANE = 8
MAX_BLOCK_ROWS = 4096   # (4096, 128) f32 = 2 MiB per input block
SUB_ROWS = 512          # inner sub-tile rows (bounds in-kernel intermediates)


def _round_up(x: int, m: int) -> int:
    return ((x + m - 1) // m) * m


def _tensorcores_per_chip() -> int:
    """2 for megacore / multi-TC chips (v4 / v5p / v7x), else 1 (safe default)."""
    try:
        kind = jax.devices()[0].device_kind.lower()
    except Exception:
        return 1
    if "v4" in kind or "v5p" in kind or "v7" in kind:
        return 2
    return 1


def _row_align(*dtypes) -> int:
    """Sublane tiling of the narrowest dtype: 8 rows f32, 16 bf16, 32 int8/bool."""
    align = SUBLANE
    for dt in dtypes:
        bits = jnp.dtype(dt).itemsize * 8
        align = max(align, max(SUBLANE, 256 // bits))
    return align


def _make_wbce_kernel(weight: float, block_rows: int, sub_rows: int,
                      blocks_per_split: int, num_blocks: int, need_guard: bool):
    w_minus_1 = float(weight) - 1.0
    num_sub = block_rows // sub_rows
    rem_rows = block_rows - num_sub * sub_rows          # multiple of 8 (or 0)

    def tile_partial(pred_ref, target_ref, r0, nrows):
        # Load in native dtype, cast in-kernel (keeps HBM traffic minimal).
        p = pred_ref[pl.ds(r0, nrows), :].astype(jnp.float32)
        t = target_ref[pl.ds(r0, nrows), :].astype(jnp.float32)
        # PyTorch BCELoss clamps log outputs at -100 to avoid inf / 0*inf.
        log_p = jnp.maximum(jnp.log(p), jnp.float32(-100.0))
        log_1mp = jnp.maximum(jnp.log(1.0 - p), jnp.float32(-100.0))
        # Factored: t*log(p) + (1-t)*log(1-p) == log_1mp + t*(log_p - log_1mp)
        core = log_1mp + t * (log_p - log_1mp)
        w = t * jnp.float32(w_minus_1) + jnp.float32(1.0)
        contrib = w * core   # sign + 1/n folded into the final scalar multiply
        # vreg-shaped partial: sublane-aligned fold, pure VPU adds.
        return jnp.sum(contrib.reshape(nrows // SUBLANE, SUBLANE, LANE), axis=0)

    def kernel(pred_ref, target_ref, out_ref, acc_ref):
        c = pl.program_id(0)
        i = pl.program_id(1)

        @pl.when(i == 0)
        def _():
            acc_ref[...] = jnp.zeros_like(acc_ref)

        def accumulate_block():
            part = jnp.zeros((SUBLANE, LANE), jnp.float32)
            if num_sub > 0:
                def body(s, carry):
                    r0 = pl.multiple_of(s * sub_rows, sub_rows)
                    return carry + tile_partial(pred_ref, target_ref, r0, sub_rows)
                part = lax.fori_loop(0, num_sub, body, part,
                                     unroll=(num_sub <= 8))
            if rem_rows > 0:
                part = part + tile_partial(pred_ref, target_ref,
                                           num_sub * sub_rows, rem_rows)
            acc_ref[...] += part

        if need_guard:
            # Scalar guard: skip the duplicated (clamped) logical block entirely.
            @pl.when(c * blocks_per_split + i < num_blocks)
            def _():
                accumulate_block()
        else:
            accumulate_block()

        @pl.when(i == pl.num_programs(1) - 1)
        def _():
            # Single cross-lane reduction, once per core.
            out_ref[0, 0] = jnp.sum(acc_ref[...])

    return kernel


def weighted_bce(pred, target, weight: float = 10.0):
    """Weighted BCE loss (mean reduction). pred/target: same shape, any rank."""
    assert pred.shape == target.shape
    n = pred.size
    assert n > 0

    row_align = _row_align(pred.dtype, target.dtype)

    # Rows of 128 lanes needed, aligned to the dtype's sublane tiling.
    rows_needed = _round_up(pl.cdiv(n, LANE), row_align)

    # Roughly equal-sized blocks -> host-side padding stays tiny
    # (<= num_blocks * row_align rows) even for awkward sizes.
    num_blocks = max(1, pl.cdiv(rows_needed, MAX_BLOCK_ROWS))
    block_rows = _round_up(pl.cdiv(rows_needed, num_blocks), row_align)
    rows = num_blocks * block_rows
    n_pad = rows * LANE - n

    p_flat = jnp.ravel(pred)
    t_flat = jnp.ravel(target)
    if n_pad:
        # Zero-loss padding: pred=1, target=1 -> w*(log1mp + t*(logp-log1mp)) == 0
        # exactly (the -100 clamp keeps log(0) finite), so no element mask needed.
        p_flat = jnp.pad(p_flat, (0, n_pad), constant_values=1)
        t_flat = jnp.pad(t_flat, (0, n_pad), constant_values=1)
    p2 = p_flat.reshape(rows, LANE)
    t2 = t_flat.reshape(rows, LANE)

    # Use both TensorCores only on multi-TC chips; 1 split on v5e/v6e.
    num_splits = 2 if (_tensorcores_per_chip() >= 2 and num_blocks >= 2) else 1
    blocks_per_split = pl.cdiv(num_blocks, num_splits)
    # Guard only needed when the 2-way split rounds up to an extra logical block.
    need_guard = (num_splits * blocks_per_split != num_blocks)

    last_block = num_blocks - 1

    def in_map(c, i):
        # Clamp so the duplicated logical block re-reads valid data; its compute
        # is skipped by the scalar pl.when guard in the kernel.
        return (jnp.minimum(c * blocks_per_split + i, last_block), 0)

    sub_rows = min(SUB_ROWS, block_rows)
    kernel = _make_wbce_kernel(float(weight), block_rows, sub_rows,
                               blocks_per_split, num_blocks, need_guard)

    partials = pl.pallas_call(
        kernel,
        out_shape=jax.ShapeDtypeStruct((num_splits, 1), jnp.float32),
        grid_spec=pltpu.PrefetchScalarGridSpec(
            num_scalar_prefetch=0,
            grid=(num_splits, blocks_per_split),
            in_specs=[
                pl.BlockSpec((block_rows, LANE), in_map),
                pl.BlockSpec((block_rows, LANE), in_map),
            ],
            out_specs=pl.BlockSpec((1, 1), lambda c, i: (c, 0),
                                   memory_space=pltpu.SMEM),
            scratch_shapes=[pltpu.VMEM((SUBLANE, LANE), jnp.float32)],
        ),
        compiler_params=pltpu.CompilerParams(
            dimension_semantics=("parallel", "arbitrary"),
            vmem_limit_bytes=32 * 1024 * 1024,
        ),
    )(p2, t2)

    # Fold sign and mean into one scalar multiply: loss = -sum/n.
    return jnp.sum(partials[:, 0]) * jnp.float32(-1.0 / n)


def weighted_bce_ref(pred, target, weight: float = 10.0):
    p = pred.astype(jnp.float32)
    t = target.astype(jnp.float32)
    w = t * (weight - 1.0) + 1.0
    log_p = jnp.maximum(jnp.log(p), -100.0)
    log_1mp = jnp.maximum(jnp.log(1.0 - p), -100.0)
    return jnp.mean(-w * (t * log_p + (1.0 - t) * log_1mp))


if __name__ == "__main__":
    key = jax.random.PRNGKey(0)

    # NCHW, as in PyTorch conv-style outputs.
    k1, k2 = jax.random.split(key)
    shape = (2, 4, 16, 16)
    pred = jax.nn.sigmoid(jax.random.normal(k1, shape, jnp.float32))
    target = (jax.random.uniform(k2, shape) > 0.5).astype(jnp.float32)

    loss = jax.block_until_ready(weighted_bce(pred, target, weight=10.0))
    ref = weighted_bce_ref(pred, target, weight=10.0)
    assert jnp.allclose(loss, ref, rtol=1e-5, atol=1e-5), (loss, ref)

    # Ragged size: exercises the zero-loss padding path.
    k3, k4 = jax.random.split(k2)
    shape2 = (3, 5, 7, 11)
    pred2 = jax.nn.sigmoid(jax.random.normal(k3, shape2, jnp.float32))
    target2 = (jax.random.uniform(k4, shape2) > 0.5).astype(jnp.float32)

    loss2 = jax.block_until_ready(weighted_bce(pred2, target2, weight=10.0))
    ref2 = weighted_bce_ref(pred2, target2, weight=10.0)
    assert jnp.allclose(loss2, ref2, rtol=1e-5, atol=1e-5), (loss2, ref2)

    print("KERNEL_OK")
</pallas_src>

<mosaic_0001>
module attributes {stable_mosaic.version = 11 : i64} {
  func.func @kernel(%arg0: i32, %arg1: i32, %arg2: memref<16x128xf32, #tpu.memory_space<vmem>>, %arg3: memref<16x128xf32, #tpu.memory_space<vmem>>, %arg4: memref<1x1xf32, #tpu.memory_space<smem>>, %arg5: memref<8x128xf32, #tpu.memory_space<vmem>>) attributes {dimension_semantics = [#tpu.dimension_semantics<parallel>, #tpu.dimension_semantics<arbitrary>], iteration_bounds = array<i64: 1, 1>, scalar_prefetch = 0 : i64, scratch_operands = 1 : i64, tpu.core_type = #tpu.core_type<tc>, window_params = [{transform_indices = @transform_0, window_bounds = array<i64: 16, 128>}, {transform_indices = @transform_1, window_bounds = array<i64: 16, 128>}, {transform_indices = @transform_2, window_bounds = array<i64: 1, 1>}]} {
    %c0_i32 = arith.constant 0 : i32
    %0 = arith.cmpi eq, %arg1, %c0_i32 : i32
    %1 = arith.extui %0 : i1 to i32
    %c0_i32_0 = arith.constant 0 : i32
    %2 = arith.cmpi ne, %1, %c0_i32_0 : i32
    scf.if %2 {
      %cst_15 = arith.constant 0.000000e+00 : f32
      %35 = vector.broadcast %cst_15 : f32 to vector<8x128xf32>
      %c0_16 = arith.constant 0 : index
      %c0_17 = arith.constant 0 : index
      %36 = vector.load %arg5[%c0_16, %c0_17] : memref<8x128xf32, #tpu.memory_space<vmem>>, vector<8x128xf32>
      tpu.vector_store %arg5[%c0_16, %c0_17], %35 {strides = array<i32>} : memref<8x128xf32, #tpu.memory_space<vmem>>, vector<8x128xf32>,
    } else {
    }
    %cst = arith.constant 0.000000e+00 : f32
    %3 = vector.broadcast %cst : f32 to vector<8x128xf32>
    %c0_i32_1 = arith.constant 0 : i32
    %c16_i32 = arith.constant 16 : i32
    %4 = arith.muli %c0_i32_1, %c16_i32 : i32
    %5 = tpu.assume_multiple %4, 16 : i32
    %6 = arith.index_cast %5 : i32 to index
    %c0 = arith.constant 0 : index
    %7 = vector.load %arg2[%6, %c0] : memref<16x128xf32, #tpu.memory_space<vmem>>, vector<16x128xf32>
    %8 = arith.index_cast %5 : i32 to index
    %c0_2 = arith.constant 0 : index
    %9 = vector.load %arg3[%8, %c0_2] : memref<16x128xf32, #tpu.memory_space<vmem>>, vector<16x128xf32>
    %10 = math.log %7 : vector<16x128xf32>
    %cst_3 = arith.constant -1.000000e+02 : f32
    %11 = vector.broadcast %cst_3 : f32 to vector<16x128xf32>
    %12 = arith.maximumf %10, %11 : vector<16x128xf32>
    %cst_4 = arith.constant 1.000000e+00 : f32
    %13 = vector.broadcast %cst_4 : f32 to vector<16x128xf32>
    %14 = arith.subf %13, %7 : vector<16x128xf32>
    %15 = math.log %14 : vector<16x128xf32>
    %cst_5 = arith.constant -1.000000e+02 : f32
    %16 = vector.broadcast %cst_5 : f32 to vector<16x128xf32>
    %17 = arith.maximumf %15, %16 : vector<16x128xf32>
    %18 = arith.subf %12, %17 : vector<16x128xf32>
    %19 = arith.mulf %9, %18 : vector<16x128xf32>
    %20 = arith.addf %17, %19 : vector<16x128xf32>
    %cst_6 = arith.constant 9.000000e+00 : f32
    %21 = vector.broadcast %cst_6 : f32 to vector<16x128xf32>
    %22 = arith.mulf %9, %21 : vector<16x128xf32>
    %cst_7 = arith.constant 1.000000e+00 : f32
    %23 = vector.broadcast %cst_7 : f32 to vector<16x128xf32>
    %24 = arith.addf %22, %23 : vector<16x128xf32>
    %25 = arith.mulf %24, %20 : vector<16x128xf32>
    %26 = vector.shape_cast %25 : vector<16x128xf32> to vector<2x8x128xf32>
    %cst_8 = arith.constant dense<0.000000e+00> : vector<8x128xf32>
    %27 = vector.multi_reduction <add>, %26, %cst_8 [0] : vector<2x8x128xf32> to vector<8x128xf32>
    %28 = arith.addf %3, %27 : vector<8x128xf32>
    %c1_i32 = arith.constant 1 : i32
    %c0_9 = arith.constant 0 : index
    %c0_10 = arith.constant 0 : index
    %29 = vector.load %arg5[%c0_9, %c0_10] : memref<8x128xf32, #tpu.memory_space<vmem>>, vector<8x128xf32>
    %30 = arith.addf %29, %28 : vector<8x128xf32>
    %c0_11 = arith.constant 0 : index
    %c0_12 = arith.constant 0 : index
    %31 = vector.load %arg5[%c0_11, %c0_12] : memref<8x128xf32, #tpu.memory_space<vmem>>, vector<8x128xf32>
    tpu.vector_store %arg5[%c0_11, %c0_12], %30 {strides = array<i32>} : memref<8x128xf32, #tpu.memory_space<vmem>>, vector<8x128xf32>,
    %c0_i32_13 = arith.constant 0 : i32
    %32 = arith.cmpi eq, %arg1, %c0_i32_13 : i32
    %33 = arith.extui %32 : i1 to i32
    %c0_i32_14 = arith.constant 0 : i32
    %34 = arith.cmpi ne, %33, %c0_i32_14 : i32
    scf.if %34 {
      %c0_15 = arith.constant 0 : index
      %c0_16 = arith.constant 0 : index
      %35 = vector.load %arg5[%c0_15, %c0_16] : memref<8x128xf32, #tpu.memory_space<vmem>>, vector<8x128xf32>
      %36 = vector.shape_cast %35 : vector<8x128xf32> to vector<1x8x128xf32>
      %cst_17 = arith.constant dense<0.000000e+00> : vector<1xf32>
      %37 = vector.multi_reduction <add>, %36, %cst_17 [1, 2] : vector<1x8x128xf32> to vector<1xf32>
      %38 = vector.shape_cast %37 : vector<1xf32> to vector<1x1x1xf32>
      %39 = vector.extract %38[0, 0, 0] : f32 from vector<1x1x1xf32>
      %c0_18 = arith.constant 0 : index
      %c0_19 = arith.constant 0 : index
      %40 = memref.load %arg4[%c0_18, %c0_19] : memref<1x1xf32, #tpu.memory_space<smem>>
      memref.store %39, %arg4[%c0_18, %c0_19] : memref<1x1xf32, #tpu.memory_space<smem>>
    } else {
    }
    return
  }
  func.func @transform_0(%arg0: i32, %arg1: i32) -> (i32, i32) {
    %c1_i32 = arith.constant 1 : i32
    %0 = arith.muli %arg0, %c1_i32 : i32
    %1 = arith.addi %0, %arg1 : i32
    %c0_i32 = arith.constant 0 : i32
    %2 = arith.minsi %1, %c0_i32 : i32
    %c0_i32_0 = arith.constant 0 : i32
    %c0_i32_1 = arith.constant 0 : i32
    return %2, %c0_i32_0 : i32, i32
  }
  func.func @transform_1(%arg0: i32, %arg1: i32) -> (i32, i32) {
    %c1_i32 = arith.constant 1 : i32
    %0 = arith.muli %arg0, %c1_i32 : i32
    %1 = arith.addi %0, %arg1 : i32
    %c0_i32 = arith.constant 0 : i32
    %2 = arith.minsi %1, %c0_i32 : i32
    %c0_i32_0 = arith.constant 0 : i32
    %c0_i32_1 = arith.constant 0 : i32
    return %2, %c0_i32_0 : i32, i32
  }
  func.func @transform_2(%arg0: i32, %arg1: i32) -> (i32, i32) {
    %c0_i32 = arith.constant 0 : i32
    %c0_i32_0 = arith.constant 0 : i32
    return %arg0, %c0_i32 : i32, i32
  }
}

</mosaic_0001>

<bundles_post_ra>
// kernel: tpu_custom_call.1
= control target key start
LH: loop header
LB: loop body
LE: loop exit
PB: predicated region body
PF: predicated region fallthrough
CT: control target
= control target key end

     0   :  { %7 = vsyncpa [#allocation4], 0  ;;  %s250_s0 = inlined_call_operand.hbm [shape: f32[16,128], index: 0, kind: input, shape index: {}]   ;;  %s251_s1 = inlined_call_operand.hbm [shape: f32[16,128], index: 1, kind: input, shape index: {}]   ;;  %s252_s2 = inlined_call_operand.hbm [shape: f32[1,1], index: 2, kind: output, shape index: {}]  }
   0x1   :  { %8 = vsyncpa [#allocation7], 0 }
   0x2   :  { %9 = vsyncpa [#allocation5], 0  ;;  %s20_s11 = sshll.u32 %s250_s0, 4  ;;  %s221_s12 = smov [#allocation3]   ;;  %s21_s11 = int_to_ptr.hbm [resolvable:$true] %s20_s11 }
   0x3   :  { %s22_s13 = sshll.u32 %s221_s12, 4  ;;  %s39_s16 = sshll.u32 %s251_s1, 4  ;;  %s23_s13 = int_to_ptr.vmem [resolvable:$true] %s22_s13  ;;  %s40_s16 = int_to_ptr.hbm [resolvable:$true] %s39_s16 }
   0x4   :  { %s222_s17 = smov 128   ;;  %s223_s18 = smov 8  }
   0x5   :  { %28 = dma.hbm_to_vmem [thread:$0]  %s21_s11, 256, %s23_s13, [#allocation4], %s222_s17, %s222_s17, %s223_s18  }
   0x6   :  { %s224_s19 = smov [#allocation6]  }
   0x7   :  { %s41_s20 = sshll.u32 %s224_s19, 4  ;;  %s42_s20 = int_to_ptr.vmem [resolvable:$true] %s41_s20 }
   0x8   :  { %47 = dma.hbm_to_vmem [thread:$0]  %s40_s16, 256, %s42_s20, [#allocation7], %s222_s17, %s222_s17, %s223_s18  }
   0x9   :  { %215 = dma.done.wait [#allocation4], 256  }
   0xa   :  { %216 = vsyncadd [#allocation4], 4294967040 }
   0xb   :  { %217 = dma.done.wait [#allocation7], 256  }
   0xc   :  { %218 = vsyncadd [#allocation7], 4294967040  ;;  %v69_v0 = vld [vmem:[#allocation3] sm:$0xff]  ;;  %v70_v1 = vld [vmem:[#allocation3 + $0x8] sm:$0xff]  ;;  %s124_s21 = sshll.u32 %s252_s2, 4  ;;  %s225_s23 = smov [#allocation8]   ;;  %s125_s21 = int_to_ptr.hbm [resolvable:$true] %s124_s21 }
   0xd   :  { %147 = vlog2.f32 %v69_v0  ;;  %v79_v2 = vsub.f32 1.0, %v69_v0  ;;  %v80_v3 = vsub.f32 1.0, %v70_v1  ;;  %v71_v8 = vld [vmem:[#allocation6] sm:$0xff]  ;;  %v72_v11 = vld [vmem:[#allocation6 + $0x8] sm:$0xff] }
   0xe   :  { %149 = vlog2.f32 %v70_v1  ;;  %v93_v17 = vmul.f32 9.0, %v71_v8  ;;  %v94_v19 = vmul.f32 9.0, %v72_v11 }
   0xf   :  { %151 = vlog2.f32 %v79_v2 }
  0x10   :  { %153 = vlog2.f32 %v80_v3  ;;  %v95_v23 = vadd.f32 1.0, %v93_v17  ;;  %v96_v25 = vadd.f32 1.0, %v94_v19 }
  0x13   :  { %v148_v4 = vpop.eup %147 }
  0x14   :  { %v150_v5 = vpop.eup %149  ;;  %v74_v6 = vmul.f32 0.6931472, %v148_v4 }
  0x15   :  { %v152_v7 = vpop.eup %151  ;;  %v76_v9 = vmul.f32 0.6931472, %v150_v5 }
  0x16   :  { %v154_v10 = vpop.eup %153  ;;  %v77_v12 = vmax.f32 %v74_v6, -100.0  ;;  %v82_v13 = vmul.f32 0.6931472, %v152_v7 }
  0x17   :  { %v78_v14 = vmax.f32 %v76_v9, -100.0  ;;  %v84_v15 = vmul.f32 0.6931472, %v154_v10 }
  0x18   :  { %v85_v16 = vmax.f32 %v82_v13, -100.0 }
  0x19   :  { %v86_v18 = vmax.f32 %v84_v15, -100.0 }
  0x1a   :  { %v87_v20 = vsub.f32 %v77_v12, %v85_v16 }
  0x1b   :  { %v88_v21 = vsub.f32 %v78_v14, %v86_v18 }
  0x1c   :  { %v89_v22 = vmul.f32 %v87_v20, %v71_v8 }
  0x1d   :  { %v90_v24 = vmul.f32 %v88_v21, %v72_v11 }
  0x1e   :  { %v91_v26 = vadd.f32 %v89_v22, %v85_v16 }
  0x1f   :  { %v92_v27 = vadd.f32 %v90_v24, %v86_v18 }
  0x20   :  { %v97_v28 = vmul.f32 %v95_v23, %v91_v26 }
  0x21   :  { %v98_v29 = vmul.f32 %v96_v25, %v92_v27 }
  0x23   :  { %v99_v30 = vadd.f32 %v98_v29, %v97_v28 }
  0x25   :  { %108 = vadd.xlane.f32.xlu0 %v99_v30 }
  0x98   :  { %v109_v31 = vpop.xlane.xlu0 %108 }
  0x99   :  { %v110_v32 = vrot.slane %v109_v31, 4 }
  0x9b   :  { %v111_v33 = vadd.f32 %v110_v32, %v109_v31 }
  0x9d   :  { %v112_v34 = vrot.slane %v111_v33, 2 }
  0x9f   :  { %v113_v35 = vadd.f32 %v112_v34, %v111_v33 }
  0xa1   :  { %v114_v36 = vrot.slane %v113_v35, 1 }
  0xa3   :  { %v115_v37 = vadd.f32 %v114_v36, %v113_v35 }
  0xa5   :  { %140 = vpush %v115_v37 }
  0xd6   :  { %s141_s22 = spop %140 }
  0xd7   :  { %118 = sst [smem:[#allocation8]] %s141_s22 }
  0xd8   :  { %127 = dma.smem_to_hbm %s225_s23, 16, %s125_s21, [#allocation5]  }
  0xd9   :  { %219 = dma.done.wait [#allocation5], 16  }
  0xda   :  { %220 = vsyncadd [#allocation5], 4294967280 }
  0xdb   :  { %132 = sfence }
  0xdc   :  { %133 = vsyncpa [#allocation4], 1 }
  0xdd   :  { %134 = vsyncpa [#allocation7], 1 }
  0xde   :  { %135 = vsyncpa [#allocation5], 1 }

</bundles_post_ra>
